<compile_context>
chip_gen: v6e
topology: v6e:2x2x1
jax: 0.10.0
libtpu: 0.0.40
codegen_flags: <defaults>
</compile_context>

<pallas_src>
import jax
import jax.numpy as jnp
from jax.experimental import pallas as pl
from jax.experimental.pallas import tpu as pltpu


def _round_up(x, m):
    return (x + m - 1) // m * m


def _make_loss_kernel(n_valid):
    """Embedding gather + per-tile cross-entropy partial sum."""

    def kernel(tok_ref, table_ref, logits_ref, loss_ref):
        # tok_ref:    (tile_n, 2)     int32   [:, 0]=idx, [:, 1]=target
        # table_ref:  (V_pad, V_pad)  bf16    padded columns pre-filled -1e30
        # logits_ref: (tile_n, V_pad) bf16    lane-dense store
        # loss_ref:   (1, 8, 128)     f32     per-tile loss sum (broadcast)
        tile_n = tok_ref.shape[0]
        v_pad = table_ref.shape[1]

        col = jax.lax.broadcasted_iota(jnp.int32, (tile_n, v_pad), 1)
        idx = tok_ref[:, 0:1]
        tgt = tok_ref[:, 1:2]

        # Embedding gather as a one-hot matmul on the MXU (f32 accumulate).
        onehot = (idx == col).astype(table_ref.dtype)
        logits = jnp.dot(onehot, table_ref[...],
                         preferred_element_type=jnp.float32)
        logits_ref[...] = logits.astype(logits_ref.dtype)

        # Cross-entropy.  Padded vocab columns already hold -1e30 (baked into
        # the table in the wrapper), so no column mask is needed here; their
        # exp underflows cleanly to 0.  Targets never hit padded columns.
        m = jnp.max(logits, axis=-1, keepdims=True)
        lse = m + jnp.log(jnp.sum(jnp.exp(logits - m), axis=-1, keepdims=True))
        picked = jnp.sum(jnp.where(tgt == col, logits, 0.0),
                         axis=-1, keepdims=True)

        # Mask rows beyond the true N (padding in the last tile(s)), reduce to
        # one per-tile partial sum, store it lane-dense (no masked vst column).
        row = jax.lax.broadcasted_iota(jnp.int32, (tile_n, 1), 0)
        valid = (pl.program_id(0) * tile_n + row) < n_valid
        loss_rows = jnp.where(valid, lse - picked, 0.0)        # (tile_n, 1)
        tile_sum = jnp.sum(loss_rows, axis=0, keepdims=True)   # (1, 1)
        loss_ref[...] = jnp.broadcast_to(tile_sum[:, None, :], loss_ref.shape)

    return kernel


def _logits_kernel(tok_ref, table_ref, logits_ref):
    """Generation path: embedding gather only (no loss math, no extra output)."""
    tile_n = tok_ref.shape[0]
    v_pad = table_ref.shape[1]
    col = jax.lax.broadcasted_iota(jnp.int32, (tile_n, v_pad), 1)
    onehot = (tok_ref[:, 0:1] == col).astype(table_ref.dtype)
    logits_ref[...] = jnp.dot(
        onehot, table_ref[...],
        preferred_element_type=jnp.float32).astype(logits_ref.dtype)


def bigram_forward(idx, targets, table, *, tile_n_target=1024,
                   table_dtype=jnp.bfloat16):
    """Equivalent of BiGramModel.forward.

      * targets given -> (logits (B*T, V) f32, scalar mean CE loss)
      * targets None  -> (logits (B, T, V) f32, None)

    Pass table_dtype=jnp.float32 for exact f32 parity with nn.Embedding
    (bf16 default keeps MXU-native inputs and a lossless bf16 logits store).
    """
    B, T = idx.shape
    V = table.shape[0]
    N = B * T
    have_targets = targets is not None

    table_dtype = jnp.dtype(table_dtype)
    logits_store_dtype = (jnp.bfloat16 if table_dtype == jnp.dtype(jnp.bfloat16)
                          else jnp.float32)

    V_pad = _round_up(max(V, 128), 128)

    # Row tiling: tile count is even and >= 2 (so "parallel" splits across
    # v7x's two TensorCores even for tiny N); rows aligned to the sublane
    # packing of the logits store dtype; big tiles (default 1024) amortize the
    # ~0.35us per-grid-step overhead.  VMEM footprint stays tiny everywhere.
    row_align = 16 if jnp.dtype(logits_store_dtype).itemsize < 4 else 8
    tile_n = max(row_align,
                 min(tile_n_target, _round_up(-(-N // 2), row_align)))
    n_pad = _round_up(N, 2 * tile_n)
    num_tiles = n_pad // tile_n          # even, >= 2

    # Single merged int32 input: column 0 = idx, column 1 = targets.
    # Padded rows use idx = tgt = 0 (a valid table row); their loss is masked
    # in-kernel and their logits are sliced away below.
    tok = jnp.zeros((n_pad, 2), jnp.int32)
    tok = tok.at[:N, 0].set(idx.reshape(N).astype(jnp.int32))
    if have_targets:
        tok = tok.at[:N, 1].set(targets.reshape(N).astype(jnp.int32))

    # Table padded to (V_pad, V_pad).  Padded vocab *columns* carry -1e30 so
    # the in-kernel logsumexp needs no column mask.  Padded *rows* are never
    # gathered (their one-hot weight is 0), so their contents are irrelevant.
    table_p = jnp.full((V_pad, V_pad), -1e30, table_dtype)
    table_p = table_p.at[:V, :V].set(table.astype(table_dtype))

    table_bytes = V_pad * V_pad * table_dtype.itemsize
    logits_bytes = n_pad * V_pad * jnp.dtype(logits_store_dtype).itemsize
    tile_bytes = (tile_n * 2 * 4
                  + tile_n * V_pad * jnp.dtype(logits_store_dtype).itemsize
                  + 8 * 128 * 4)
    vmem_limit = int(min(2 * table_bytes + 2 * tile_bytes + (4 << 20),
                         32 << 20))

    tok_spec = pl.BlockSpec((tile_n, 2), lambda i: (i, 0))
    table_spec = pl.BlockSpec((V_pad, V_pad), lambda i: (0, 0))
    logits_spec = pl.BlockSpec((tile_n, V_pad), lambda i: (i, 0))
    compiler_params = pltpu.CompilerParams(
        dimension_semantics=("parallel",),
        vmem_limit_bytes=vmem_limit)

    if have_targets:
        cost = pl.CostEstimate(
            flops=2 * n_pad * V_pad * V_pad,              # one-hot @ table
            transcendentals=n_pad * V_pad + n_pad,        # exp + log
            bytes_accessed=(n_pad * 2 * 4                 # merged idx/tgt
                            + table_bytes                 # table, once
                            + logits_bytes                # bf16 logits out
                            + num_tiles * 8 * 128 * 4),   # per-tile loss out
        )
        logits_p, loss_tiles = pl.pallas_call(
            _make_loss_kernel(N),
            out_shape=(
                jax.ShapeDtypeStruct((n_pad, V_pad), logits_store_dtype),
                jax.ShapeDtypeStruct((num_tiles, 8, 128), jnp.float32),
            ),
            grid=(num_tiles,),
            in_specs=[tok_spec, table_spec],
            out_specs=(
                logits_spec,
                pl.BlockSpec((1, 8, 128), lambda i: (i, 0, 0)),
            ),
            compiler_params=compiler_params,
            cost_estimate=cost,
        )(tok, table_p)
        logits = logits_p[:N, :V].astype(jnp.float32)
        loss = jnp.sum(loss_tiles[:, 0, 0]) / jnp.float32(N)
        return logits, loss

    cost = pl.CostEstimate(
        flops=2 * n_pad * V_pad * V_pad,
        transcendentals=0,
        bytes_accessed=n_pad * 2 * 4 + table_bytes + logits_bytes,
    )
    logits_p = pl.pallas_call(
        _logits_kernel,
        out_shape=jax.ShapeDtypeStruct((n_pad, V_pad), logits_store_dtype),
        grid=(num_tiles,),
        in_specs=[tok_spec, table_spec],
        out_specs=logits_spec,
        compiler_params=compiler_params,
        cost_estimate=cost,
    )(tok, table_p)
    logits = logits_p[:N, :V].astype(jnp.float32)
    return logits.reshape(B, T, V), None


if __name__ == "__main__":
    key = jax.random.PRNGKey(0)
    k_tab, k_idx, k_tgt = jax.random.split(key, 3)

    vocab_size = 65   # tiny-shakespeare-sized char vocab
    B, T = 2, 8

    # nn.Embedding default init ~ N(0, 1)
    table = jax.random.normal(k_tab, (vocab_size, vocab_size), dtype=jnp.float32)
    idx = jax.random.randint(k_idx, (B, T), 0, vocab_size, dtype=jnp.int32)
    targets = jax.random.randint(k_tgt, (B, T), 0, vocab_size, dtype=jnp.int32)

    logits, loss = bigram_forward(idx, targets, table)
    jax.block_until_ready((logits, loss))

    # Pure-JAX reference with the same semantics as the PyTorch module, using
    # the bf16-streamed table (the kernel's gather reproduces the bf16 rows
    # exactly; CE is computed in f32 on both paths).
    table_ref = table.astype(jnp.bfloat16).astype(jnp.float32)
    ref_logits = table_ref[idx.reshape(-1)]                            # (N, V)
    ref_lse = jax.scipy.special.logsumexp(ref_logits, axis=-1)
    ref_picked = jnp.take_along_axis(ref_logits,
                                     targets.reshape(-1, 1), axis=-1)[:, 0]
    ref_loss = jnp.mean(ref_lse - ref_picked)

    assert logits.shape == (B * T, vocab_size)
    assert jnp.allclose(logits, ref_logits, atol=1e-5, rtol=1e-5)
    assert jnp.allclose(loss, ref_loss, atol=1e-4, rtol=1e-4)

    # Also exercise the targets=None branch (logits only, like the module).
    logits_nt, loss_nt = bigram_forward(idx, None, table)
    jax.block_until_ready(logits_nt)
    assert logits_nt.shape == (B, T, vocab_size) and loss_nt is None
    assert jnp.allclose(logits_nt.reshape(B * T, vocab_size), ref_logits,
                        atol=1e-5, rtol=1e-5)

    print("KERNEL_OK")
</pallas_src>

<mosaic_0001>
module attributes {stable_mosaic.version = 11 : i64} {
  func.func @kernel(%arg0: i32, %arg1: memref<16x2xi32, #tpu.memory_space<vmem>>, %arg2: memref<128x128xbf16, #tpu.memory_space<vmem>>, %arg3: memref<16x128xbf16, #tpu.memory_space<vmem>>, %arg4: memref<1x8x128xf32, #tpu.memory_space<vmem>>) attributes {dimension_semantics = [#tpu.dimension_semantics<parallel>], iteration_bounds = array<i64: 2>, scalar_prefetch = 0 : i64, scratch_operands = 0 : i64, tpu.core_type = #tpu.core_type<tc>, window_params = [{transform_indices = @transform_0, window_bounds = array<i64: 16, 2>}, {pipeline_mode = #tpu.pipeline_mode<synchronous>, transform_indices = @transform_1, window_bounds = array<i64: 128, 128>}, {transform_indices = @transform_2, window_bounds = array<i64: 16, 128>}, {transform_indices = @transform_3, window_bounds = array<i64: 1, 8, 128>}]} {
    %0 = tpu.iota {dimensions = array<i32: 1>} : vector<16x128xi32>
    %c0 = arith.constant 0 : index
    %c0_0 = arith.constant 0 : index
    %1 = vector.load %arg1[%c0, %c0_0] : memref<16x2xi32, #tpu.memory_space<vmem>>, vector<16x1xi32>
    %c0_1 = arith.constant 0 : index
    %c1 = arith.constant 1 : index
    %2 = vector.load %arg1[%c0_1, %c1] : memref<16x2xi32, #tpu.memory_space<vmem>>, vector<16x1xi32>
    %3 = vector.broadcast %1 : vector<16x1xi32> to vector<16x128xi32>
    %4 = arith.cmpi eq, %3, %0 : vector<16x128xi32>
    %5 = arith.extui %4 : vector<16x128xi1> to vector<16x128xi32>
    %6 = arith.sitofp %5 : vector<16x128xi32> to vector<16x128xf32>
    %7 = arith.truncf %6 : vector<16x128xf32> to vector<16x128xbf16>
    %c0_2 = arith.constant 0 : index
    %c0_3 = arith.constant 0 : index
    %8 = vector.load %arg2[%c0_2, %c0_3] : memref<128x128xbf16, #tpu.memory_space<vmem>>, vector<128x128xbf16>
    %cst = arith.constant dense<0.000000e+00> : vector<16x128xf32>
    %9 = tpu.matmul %7, %8, %cst {dimension_numbers = #tpu.dot_dimension_numbers<[1], [0], [0], [1], [0, 0, 1, 1], [], []>} : vector<16x128xbf16>, vector<128x128xbf16>, vector<16x128xf32> -> vector<16x128xf32>
    %10 = arith.truncf %9 : vector<16x128xf32> to vector<16x128xbf16>
    %c0_4 = arith.constant 0 : index
    %c0_5 = arith.constant 0 : index
    %11 = vector.load %arg3[%c0_4, %c0_5] : memref<16x128xbf16, #tpu.memory_space<vmem>>, vector<16x128xbf16>
    tpu.vector_store %arg3[%c0_4, %c0_5], %10 {strides = array<i32>} : memref<16x128xbf16, #tpu.memory_space<vmem>>, vector<16x128xbf16>,
    %cst_6 = arith.constant dense<0xFF800000> : vector<16xf32>
    %12 = vector.multi_reduction <maximumf>, %9, %cst_6 [1] : vector<16x128xf32> to vector<16xf32>
    %13 = vector.shape_cast %12 : vector<16xf32> to vector<16x1xf32>
    %14 = vector.broadcast %13 : vector<16x1xf32> to vector<16x128xf32>
    %15 = arith.subf %9, %14 : vector<16x128xf32>
    %16 = math.exp %15 : vector<16x128xf32>
    %cst_7 = arith.constant dense<0.000000e+00> : vector<16xf32>
    %17 = vector.multi_reduction <add>, %16, %cst_7 [1] : vector<16x128xf32> to vector<16xf32>
    %18 = vector.shape_cast %17 : vector<16xf32> to vector<16x1xf32>
    %19 = math.log %18 : vector<16x1xf32>
    %20 = arith.addf %13, %19 : vector<16x1xf32>
    %21 = vector.broadcast %2 : vector<16x1xi32> to vector<16x128xi32>
    %22 = arith.cmpi eq, %21, %0 : vector<16x128xi32>
    %cst_8 = arith.constant 0.000000e+00 : f32
    %23 = vector.broadcast %cst_8 : f32 to vector<16x128xf32>
    %24 = arith.select %22, %9, %23 : vector<16x128xi1>, vector<16x128xf32>
    %cst_9 = arith.constant dense<0.000000e+00> : vector<16xf32>
    %25 = vector.multi_reduction <add>, %24, %cst_9 [1] : vector<16x128xf32> to vector<16xf32>
    %26 = vector.shape_cast %25 : vector<16xf32> to vector<16x1xf32>
    %27 = tpu.iota {dimensions = array<i32: 0>} : vector<16x1xi32>
    %c16_i32 = arith.constant 16 : i32
    %28 = arith.muli %arg0, %c16_i32 : i32
    %29 = vector.broadcast %28 : i32 to vector<16x1xi32>
    %30 = arith.addi %29, %27 : vector<16x1xi32>
    %c16_i32_10 = arith.constant 16 : i32
    %31 = vector.broadcast %c16_i32_10 : i32 to vector<16x1xi32>
    %32 = arith.cmpi slt, %30, %31 : vector<16x1xi32>
    %33 = arith.subf %20, %26 : vector<16x1xf32>
    %cst_11 = arith.constant 0.000000e+00 : f32
    %34 = vector.broadcast %cst_11 : f32 to vector<16x1xf32>
    %35 = arith.select %32, %33, %34 : vector<16x1xi1>, vector<16x1xf32>
    %cst_12 = arith.constant dense<0.000000e+00> : vector<1xf32>
    %36 = vector.multi_reduction <add>, %35, %cst_12 [0] : vector<16x1xf32> to vector<1xf32>
    %37 = vector.shape_cast %36 : vector<1xf32> to vector<1x1xf32>
    %38 = vector.shape_cast %37 : vector<1x1xf32> to vector<1x1x1xf32>
    %39 = vector.shape_cast %38 : vector<1x1x1xf32> to vector<1x1x1xf32>
    %40 = vector.broadcast %39 : vector<1x1x1xf32> to vector<1x8x128xf32>
    %c0_13 = arith.constant 0 : index
    %c0_14 = arith.constant 0 : index
    %c0_15 = arith.constant 0 : index
    %41 = vector.load %arg4[%c0_13, %c0_14, %c0_15] : memref<1x8x128xf32, #tpu.memory_space<vmem>>, vector<1x8x128xf32>
    tpu.vector_store %arg4[%c0_13, %c0_14, %c0_15], %40 {strides = array<i32>} : memref<1x8x128xf32, #tpu.memory_space<vmem>>, vector<1x8x128xf32>,
    return
  }
  func.func @transform_0(%arg0: i32) -> (i32, i32) {
    %c0_i32 = arith.constant 0 : i32
    %c0_i32_0 = arith.constant 0 : i32
    return %arg0, %c0_i32 : i32, i32
  }
  func.func @transform_1(%arg0: i32) -> (i32, i32) {
    %c0_i32 = arith.constant 0 : i32
    %c0_i32_0 = arith.constant 0 : i32
    %c0_i32_1 = arith.constant 0 : i32
    return %c0_i32, %c0_i32_0 : i32, i32
  }
  func.func @transform_2(%arg0: i32) -> (i32, i32) {
    %c0_i32 = arith.constant 0 : i32
    %c0_i32_0 = arith.constant 0 : i32
    return %arg0, %c0_i32 : i32, i32
  }
  func.func @transform_3(%arg0: i32) -> (i32, i32, i32) {
    %c0_i32 = arith.constant 0 : i32
    %c0_i32_0 = arith.constant 0 : i32
    %c0_i32_1 = arith.constant 0 : i32
    return %arg0, %c0_i32, %c0_i32_0 : i32, i32, i32
  }
}

</mosaic_0001>

<bundles_post_ra>
// kernel: tpu_custom_call.1
= control target key start
LH: loop header
LB: loop body
LE: loop exit
PB: predicated region body
PF: predicated region fallthrough
CT: control target
= control target key end

     0   :  { %9 = vsyncpa [#allocation3], 0  ;;  %s983_s0 = inlined_call_operand.vmem [shape: s32[32,2], index: 0, kind: input, shape index: {}]   ;;  %s984_s1 = inlined_call_operand.hbm [shape: bf16[128,128], index: 1, kind: input, shape index: {}]   ;;  %s985_s2 = inlined_call_operand.hbm [shape: bf16[32,128], index: 2, kind: output, shape index: {0}]   ;;  %s986_s3 = inlined_call_operand.hbm [shape: f32[2,8,128], index: 3, kind: output, shape index: {1}]  }
   0x1   :  { %10 = vsyncpa [#allocation4], 0 }
   0x2   :  { %12 = vsyncpa [#allocation4 + $0x1], 0 }
   0x3   :  { %13 = vsyncpa [#allocation7], 0 }
   0x4   :  { %15 = vsyncpa [#allocation7 + $0x1], 0  ;;  %s830_s12 = smov 0   ;;  %s832_s13 = smov 0  }
   0x5   :  { %s834_s14 = smov 0   ;;  %s836_s15 = smov 0  }
   0x6 LB: > { %s851_s16 = sadd.s32 4294967295, %s796_s15   ;;  %s524_s17 = sadd.s32 4294967294, %s796_s15   ;;  %s796_s15 = sphi %s836_s15, %s994_s15   ;;  %s792_s14 = sphi %s834_s14, %s993_s14   ;;  %s788_s13 = sphi %s832_s13, %s992_s13   ;;  %s784_s12 = sphi %s830_s12, %s991_s12  }
   0x7   : > { %s855_s18 = sadd.s32 1, %s796_s15   ;;  %s75_s19 = sadd.s32 1, %s792_s14 }
   0x8   : > { %s72_s20 = ssub.s32 %s796_s15, %s855_s18  ;;  %p85_p0 = scmp.ne.s32.totalorder %s792_s14, %s788_s13 }
   0x9   : > { %p73_p1 = scmp.eq.s32.totalorder %s72_s20, 0  ;;  %p86_p2 = scmp.eq.s32.totalorder %s851_s16, 1 }
   0xa   : > { %p91_p3 = scmp.ne.s32.totalorder %s788_s13, %s784_s12  ;;  %p92_p4 = scmp.eq.s32.totalorder %s524_s17, 1 }
   0xb   : > { %s866_s21 = scalar_select %p73_p1, %s792_s14, %s75_s19  }
   0xc   : > { %p868_p5 = por %p86_p2, %p85_p0  ;;  %p872_p6 = por %p92_p4, %p91_p3 }
   0xd   : > { %p525_p7 = scmp.ge.s32.totalorder %s796_s15, 1  ;;  %p125_p8 = scmp.lt.s32.totalorder %s796_s15, 3 }
   0xe   : > { %s988_s23 = scalar_select %p872_p6, 1, 0 }
   0xf   : > { %p612_p9 = scmp.eq.s32.totalorder %s851_s16, 0  ;;  %p879_p10 = pnand %p525_p7, %p125_p8 }
  0x10   : > { %s798_s25 = smov [#allocation2]  }
  0x11   : > { %s137_s26 = sshll.u32 %s798_s25, 4  ;;  %p601_p11 = pneg %p879_p10  ;;  %s138_s26 = int_to_ptr.vmem [resolvable:$true] %s137_s26 }
  0x12   : > { %s687_s27 = scalar_lea.vmem %s138_s26, 1024  ;;  %p695_p3 = scmp.lt.s32.totalorder %s138_s26, %s138_s26 }
  0x13   : > { %p602_p12 = pnand %p612_p9, %p601_p11  ;;  %p688_p0 = scmp.ne.s32.totalorder %s138_s26, %s687_s27 }
  0x14   : > { %p696_p4 = scmp.lt.s32.totalorder %s687_s27, %s687_s27 }
  0x15   : > { %p678_p13 = pneg %p602_p12 }
  0x16   : > { %p697_p6 = por %p696_p4, %p695_p3 }
  0x17   : > { %p690_p1 = pnand %p688_p0, %p678_p13 }
  0x19   : > { %p691_p2 = pneg %p690_p1 }
  0x1b   : > { %p698_p7 = pnand %p697_p6, %p691_p2 }
  0x1d   : > { %701 = shalt.err (!%p698_p7)
}
  0x1e   : > { %s799_s28 = smov 64   ;;  %s800_s29 = smov 4  }
  0x1f   : > { %604 = dma.hbm_to_vmem [thread:$0]  (!%p602_p12), %s984_s1, 1024, %s138_s26, [#allocation3], %s799_s28, %s799_s28, %s800_s29  }
  0x20   : > { %162 = sbr.rel (%p879_p10) target bundleno = 714 (0x2ca), region = 28 }
  0x25   : > { %771 = dma.done.wait (%p612_p9), [#allocation3], 1024  }
  0x26   : > { %773 = vsyncadd (%p612_p9), [#allocation3], 4294966272  ;;  %s532_s5 = sshll.u32 %s851_s16, 1  ;;  %v801_v0 = vmov 0   ;;  %v802_v1 = vmov 0.0   ;;  %v660_v3 = vld [vmem:[#allocation2 + $0x38] sm:$0xff]   ;;  %v199_v13 = vlaneseq }
  0x27   : > { %657 = vset.pattern.permute.xlu0 %v801_v0  ;;  %p192_p6 = scmp.lt.s32.totalorder %s532_s5, 3  ;;  %573 = vmatprep.subr.bf16.mxu0 %v802_v1  ;;  %vm803_vm0 = vmmov 0   ;;  %v661_v5 = vld [vmem:[#allocation2 + $0x30] sm:$0xff]   ;;  %v804_v6 = vmov 1   ;;  %v662_v7 = vld [vmem:[#allocation2 + $0x28] sm:$0xff]   ;;  %v663_v8 = vld [vmem:[#allocation2 + $0x20] sm:$0xff]  }
  0x28   : > { %589 = vmatprep.mubr.msk.bf16.mxu0 %vm803_vm0, %v802_v1  ;;  %574 = vmatpush3.bf16.msra.mxu0 %v660_v3  ;;  %v664_v9 = vld [vmem:[#allocation2 + $0x18] sm:$0xff]   ;;  %v665_v10 = vld [vmem:[#allocation2 + $0x10] sm:$0xff]   ;;  %v666_v11 = vld [vmem:[#allocation2 + $0x8] sm:$0xff]   ;;  %v200_v15 = vand.u32 127, %v199_v13  ;;  %v805_v17 = vmov 1.0|1.0  }
  0x29   : > { %s996_s5 = smov (!%p192_p6, %s532_s5), 3  ;;  %575 = vmatprep.subr.bf16.mxu0 %v802_v1  ;;  %659 = vset.pattern.permute.xlu1 %v804_v6  ;;  %v667_v12 = vld [vmem:[#allocation2] sm:$0xff]   ;;  %s902_s10 = sand.u32 1, %s788_s13  }
  0x2a   : > { %s533_s6 = sshll.u32 %s996_s5, 3  ;;  %s530_s11 = sshll.u32 %s902_s10, 3 }
  0x2b   : > { %s195_s9 = scalar_lea.vmem %s983_s0, %s533_s6  ;;  %s183_s17 = scalar_lea.vmem [#allocation5], %s530_s11 }
  0x2c   : > { %v201_v2 = vld [vmem:[%s195_s9] sm:$0xff]  ;;  %v202_v4 = vld [vmem:[%s195_s9 + $0x8] sm:$0xff]  ;;  %576 = vmatpush3.bf16.msra.mxu0 %v661_v5  ;;  %s558_s19 = sshll.u32 %s851_s16, 7  ;;  %s405_s26 = sshll.u32 %s183_s17, 4  ;;  %s918_s26 = int_to_ptr.vmem [resolvable:$true] %s405_s26 }
  0x2d   : > { %204 = vperm.xlu0 %657, %v201_v2   ;;  %577 = vmatprep.subr.bf16.mxu0 %v802_v1  ;;  %s916_s25 = scalar_lea.hbm %s985_s2, %s558_s19  ;;  %s387_s27 = scalar_lea.sflag [#allocation4], %s902_s10 }
  0x2e   : > { %s702_s28 = scalar_lea.vmem %s918_s26, 128  ;;  %s806_s29 = smov [#allocation5]  }
  0x2f   : > { %p703_p8 = scmp.ne.s32.totalorder %s918_s26, %s702_s28  ;;  %s706_s30 = sshll.u32 %s806_s29, 4  ;;  %s707_s30 = int_to_ptr.vmem [resolvable:$false] %s706_s30 }
  0x30   : > { %578 = vmatpush3.bf16.msra.mxu0 %v662_v7  ;;  %s708_s4 = scalar_lea.vmem %s707_s30, 256  ;;  %p709_p11 = scmp.lt.s32.totalorder %s918_s26, %s707_s30 }
  0x31   : > { %207 = vperm.xlu0 %657, %v202_v4   ;;  %579 = vmatprep.subr.bf16.mxu0 %v802_v1  ;;  %p704_p9 = pnand %p703_p8, %p868_p5  ;;  %p710_p12 = scmp.lt.s32.totalorder %s708_s4, %s702_s28 }
  0x33   : > { %p705_p10 = pneg %p704_p9  ;;  %p711_p13 = por %p710_p12, %p709_p11 }
  0x34   : > { %580 = vmatpush3.bf16.msra.mxu0 %v663_v8 }
  0x35   : > { %658 = vset.pattern.permute.xlu0 %v804_v6  ;;  %581 = vmatprep.subr.bf16.mxu0 %v802_v1  ;;  %p712_p0 = pnand %p711_p13, %p705_p10 }
  0x36   : > { %352 = vperm.xlu0 %658, %v201_v2  }
  0x38   : > { %582 = vmatpush3.bf16.msra.mxu0 %v664_v9 }
  0x39   : > { %583 = vmatprep.subr.bf16.mxu0 %v802_v1 }
  0x3c   : > { %584 = vmatpush3.bf16.msra.mxu0 %v665_v10 }
  0x3d   : > { %585 = vmatprep.subr.bf16.mxu0 %v802_v1 }
  0x40   : > { %586 = vmatpush3.bf16.msra.mxu0 %v666_v11 }
  0x41   : > { %587 = vmatprep.subr.bf16.mxu0 %v802_v1 }
  0x44   : > { %588 = vmatpush3.bf16.msra.mxu0 %v667_v12 }
  0xa8   : > { %v205_v14 = vpop.permute.xlu0 %204 }
  0xa9   : > { %vm209_vm1 = vcmp.eq.s32.totalorder %v205_v14, %v200_v15 }
  0xac   : > { %v208_v16 = vpop.permute.xlu0 %207 }
  0xad   : > { %vm210_vm2 = vcmp.eq.s32.totalorder %v208_v16, %v200_v15 }
  0xae   : > { %vm544_vm3 = vmpackc.low %vm210_vm2, %vm209_vm1 }
  0xaf   : > { %590 = vmatmul.mubr.msk.bf16.vlgmr.msra.gmra.mxu0 %vm544_vm3, %v805_v17 }
  0xb1   : > { %v353_v29 = vpop.permute.xlu0 %352 }
  0xb2   : > { %vm357_vm4 = vcmp.eq.s32.totalorder %v353_v29, %v200_v15 }
 0x16f   : > { %v314_v18 = vpop.f32.mrf.mxu0 }
 0x170   : > { %331 = vmax.xlane.f32.xlu1 %v314_v18  ;;  %v359_v33 = vsel %vm357_vm4, %v314_v18, 0.0 }
 0x171   : > { %v591_v19 = vpop.f32.mrf.mxu0 }
 0x173   : > { %v317_v20 = vpop.f32.mrf.mxu0 }
 0x174   : > { %v562_v21 = vpack.c.bf16 %v317_v20, %v314_v18  ;;  %333 = vmax.xlane.f32.xlu1 %v317_v20 }
 0x175   : > { %v592_v22 = vpop.f32.mrf.mxu0 }
 0x176   : > { %563 = vst [vmem:[%s183_s17] sm:$0xff] %v562_v21  }
 0x185   : > { %355 = vperm.xlu1 %659, %v202_v4  }
 0x1f9   : > { %v332_v23 = vpop.xlane.xlu1 %331 }
 0x1fa   : > { %v335_v24 = vsub.f32 %v314_v18, %v332_v23 }
 0x1fc   : > { %v337_v25 = vmul.f32 1.442695, %v335_v24 }
 0x1fd   : > { %v907_v26 = vpop.xlane.xlu1 %333 }
 0x1fe   : > { %668 = vpow2.f32 %v337_v25  ;;  %v336_v27 = vsub.f32 %v317_v20, %v907_v26 }
 0x200   : > { %v339_v28 = vmul.f32 1.442695, %v336_v27 }
 0x201   : > { %v356_v31 = vpop.permute.xlu1 %355 }
 0x202   : > { %670 = vpow2.f32 %v339_v28  ;;  %vm358_vm5 = vcmp.eq.s32.totalorder %v356_v31, %v200_v15 }
 0x203   : > { %v360_v34 = vsel %vm358_vm5, %v317_v20, 0.0 }
 0x20b   : > { %v669_v30 = vpop.eup %668 }
 0x20c   : > { %341 = vadd.xlane.f32.xlu0 %v669_v30 }
 0x20f   : > { %v671_v32 = vpop.eup %670 }
 0x210   : > { %343 = vadd.xlane.f32.xlu1 %v671_v32  ;;  %361 = vadd.xlane.f32.xlu0 %v359_v33 }
 0x214   : > { %363 = vadd.xlane.f32.xlu0 %v360_v34 }
 0x215   : > { %715 = shalt.err (!%p712_p0)
}
 0x216   : > { %s716_s5 = scalar_lea.hbm %s916_s25, 128  ;;  %s720_s8 = scalar_lea.hbm %s985_s2, 256 }
 0x217   : > { %p717_p1 = scmp.ne.s32.totalorder %s916_s25, %s716_s5  ;;  %p721_p4 = scmp.lt.s32.totalorder %s916_s25, %s985_s2 }
 0x218   : > { %p722_p7 = scmp.lt.s32.totalorder %s720_s8, %s716_s5 }
 0x219   : > { %p718_p2 = pnand %p717_p1, %p868_p5 }
 0x21a   : > { %p723_p6 = por %p722_p7, %p721_p4 }
 0x21b   : > { %p719_p3 = pneg %p718_p2 }
 0x21d   : > { %p724_p8 = pnand %p723_p6, %p719_p3 }
 0x21f   : > { %727 = shalt.err (!%p724_p8)
}
 0x220   : > { %s807_s20 = smov 64   ;;  %s808_s24 = smov 4   ;;  %v366_v37 = vshrl.u32 %v199_v13, 7 }
 0x221   : > { %597 = dma.vmem_to_hbm [thread:$0]  (%p868_p5), %s918_s26, 128, %s916_s25, %s387_s27, %s807_s20, %s807_s20, %s808_s24  }
 0x222   : > { %s548_s28 = sshll.u32 %s851_s16, 4  ;;  %v367_v39 = vadd.s32 8, %v366_v37  ;;  %s190_s25 = scalar_lea.vmem [#allocation6], %s530_s11 }
 0x223   : > { %v369_v41 = vstv %s548_s28  ;;  %s421_s26 = sshll.u32 %s190_s25, 4  ;;  %s419_s30 = scalar_lea.hbm %s986_s3, %s558_s19  ;;  %s422_s26 = int_to_ptr.vmem [resolvable:$true] %s421_s26 }
 0x224   : > { %v370_v45 = vadd.s32 %v369_v41, %v366_v37  ;;  %v371_v46 = vadd.s32 %v369_v41, %v367_v39  ;;  %s392_s4 = scalar_lea.sflag [#allocation7], %s902_s10  ;;  %s728_s5 = scalar_lea.vmem %s422_s26, 128 }
 0x225   : > { %p729_p9 = scmp.ne.s32.totalorder %s422_s26, %s728_s5  ;;  %s809_s6 = smov [#allocation6]  }
 0x226   : > { %vm372_vm6 = vcmp.lt.s32.totalorder %v370_v45, 16  ;;  %vm373_vm7 = vcmp.lt.s32.totalorder %v371_v46, 16  ;;  %s732_s7 = sshll.u32 %s809_s6, 4  ;;  %s733_s7 = int_to_ptr.vmem [resolvable:$false] %s732_s7 }
 0x227   : > { %p730_p10 = pnand %p729_p9, %p868_p5  ;;  %s734_s11 = scalar_lea.vmem %s733_s7, 256 }
 0x228   : > { %p735_p12 = scmp.lt.s32.totalorder %s422_s26, %s733_s7  ;;  %p736_p13 = scmp.lt.s32.totalorder %s734_s11, %s728_s5 }
 0x229   : > { %p731_p11 = pneg %p730_p10 }
 0x22a   : > { %p737_p0 = por %p736_p13, %p735_p12 }
 0x22c   : > { %p738_p1 = pnand %p737_p0, %p731_p11 }
 0x295   : > { %v342_v35 = vpop.xlane.xlu0 %341 }
 0x296   : > { %672 = vlog2.f32 %v342_v35 }
 0x299   : > { %v344_v36 = vpop.xlane.xlu1 %343  ;;  %v362_v42 = vpop.xlane.xlu0 %361 }
 0x29a   : > { %674 = vlog2.f32 %v344_v36 }
 0x29d   : > { %v364_v50 = vpop.xlane.xlu0 %363 }
 0x2a3   : > { %v673_v38 = vpop.eup %672 }
 0x2a4   : > { %v346_v40 = vmul.f32 0.6931472, %v673_v38 }
 0x2a6   : > { %v349_v43 = vadd.f32 %v346_v40, %v332_v23 }
 0x2a7   : > { %v675_v44 = vpop.eup %674 }
 0x2a8   : > { %v348_v47 = vmul.f32 0.6931472, %v675_v44  ;;  %v374_v48 = vsub.f32 %v349_v43, %v362_v42 }
 0x2aa   : > { %v350_v49 = vadd.f32 %v348_v47, %v907_v26  ;;  %v376_v52 = vsel %vm372_vm6, %v374_v48, 0.0 }
 0x2ac   : > { %v375_v51 = vsub.f32 %v350_v49, %v364_v50 }
 0x2ae   : > { %v377_v53 = vsel %vm373_vm7, %v375_v51, 0.0 }
 0x2af   : > { %v378_v54 = vadd.f32 %v377_v53, %v376_v52 }
 0x2b1   : > { %v379_v55 = vrot.slane %v378_v54, 4 }
 0x2b3   : > { %v380_v56 = vadd.f32 %v379_v55, %v378_v54 }
 0x2b5   : > { %v381_v57 = vrot.slane %v380_v56, 2 }
 0x2b7   : > { %v382_v58 = vadd.f32 %v381_v57, %v380_v56 }
 0x2b9   : > { %v383_v59 = vrot.slane %v382_v58, 1 }
 0x2bb   : > { %v384_v60 = vadd.f32 %v383_v59, %v382_v58 }
 0x2bd   : > { %385 = vst [vmem:[%s190_s25] sm:$0xff] %v384_v60 }
 0x2be   : > { %741 = shalt.err (!%p738_p1)
}
 0x2bf   : > { %s742_s16 = scalar_lea.hbm %s419_s30, 128  ;;  %s746_s8 = scalar_lea.hbm %s986_s3, 256 }
 0x2c0   : > { %p743_p2 = scmp.ne.s32.totalorder %s419_s30, %s742_s16  ;;  %p747_p7 = scmp.lt.s32.totalorder %s419_s30, %s986_s3 }
 0x2c1   : > { %p748_p6 = scmp.lt.s32.totalorder %s746_s8, %s742_s16 }
 0x2c2   : > { %p744_p3 = pnand %p743_p2, %p868_p5 }
 0x2c3   : > { %p749_p8 = por %p748_p6, %p747_p7 }
 0x2c4   : > { %p745_p4 = pneg %p744_p3 }
 0x2c6   : > { %p750_p9 = pnand %p749_p8, %p745_p4 }
 0x2c8   : > { %753 = shalt.err (!%p750_p9)
}
 0x2c9   : > { %598 = dma.vmem_to_hbm [thread:$0]  (%p868_p5), %s422_s26, 128, %s419_s30, %s392_s4  }
 0x2ca PF: > { %p614_p10 = scmp.ge.s32.totalorder %s796_s15, 2  ;;  %s433_s20 = sand.u32 1, %s784_s12  }
 0x2cb   : > { %p990_p11 = scmp.ne.s32.totalorder %s988_s23, 0  ;;  %s434_s24 = scalar_lea.sflag [#allocation4], %s433_s20 }
 0x2cd   : > { %p606_p12 = pnand %p614_p10, %p990_p11 }
 0x2cf   : > { %p607_p13 = pneg %p606_p12 }
 0x2d1   : > { %775 = dma.done.wait (%p607_p13), %s434_s24, 128  }
 0x2d2   : > { %777 = vsyncadd (%p607_p13), %s434_s24, 4294967168  ;;  %s443_s28 = scalar_lea.sflag [#allocation7], %s433_s20 }
 0x2d3   : > { %779 = dma.done.wait (%p607_p13), %s443_s28, 128  }
 0x2d4   : > { %781 = vsyncadd (%p607_p13), %s443_s28, 4294967168  ;;  %p18_p5 = scmp.ge.s32.totalorder %s855_s18, 4   ;;  %s991_s12 = smov %s788_s13 }
 0x2d5   : > { %s992_s13 = smov %s792_s14  ;;  %s993_s14 = smov %s866_s21 }
 0x2d6   : > { %s994_s15 = smov %s855_s18  ;;  %20 = sbr.rel (!%p18_p5) target bundleno = 6 (0x6), region = 85 }
 0x2db   :  { %448 = vsyncpa [#allocation3], 1 }
 0x2dc   :  { %450 = vsyncpa [#allocation3 + $0x1], 1 }
 0x2dd   :  { %451 = vsyncpa [#allocation4], 1 }
 0x2de   :  { %453 = vsyncpa [#allocation4 + $0x1], 1 }
 0x2df   :  { %454 = vsyncpa [#allocation7], 1 }
 0x2e0   :  { %456 = vsyncpa [#allocation7 + $0x1], 1 }

</bundles_post_ra>
